<compile_context>
chip_gen: v6e
topology: v6e:2x2x1
jax: 0.10.0
libtpu: 0.0.40
codegen_flags: <defaults>
</compile_context>

<pallas_src>
import jax
import jax.numpy as jnp
from jax.experimental import pallas as pl
from jax.experimental.pallas import tpu as pltpu

LN_EPS = 1e-6            # ConvNeXt LayerNorm eps
BN_EPS = 1e-5            # BatchNorm1d default eps
CLS_PAD = 128            # classifier output lanes padded to a full vreg width
TILE_R_MAX = 512         # row tile for the channels-last matmul kernels
DW_TH = 8                # output-row chunk for the depthwise conv accumulator

DEPTHS = (3, 3, 27, 3)   # convnext_small
DIMS = (96, 192, 384, 768)


def _default_vmem_limit():
    # Generation-aware scoped-VMEM limit: ~3/4 of physical, capped at 100 MiB.
    cap = None
    try:
        cap = getattr(pltpu.get_tpu_info(), "vmem_capacity_bytes", None)
    except Exception:
        cap = None
    if not cap:
        cap = 64 * 1024 * 1024          # conservative fallback (v7x physical VMEM)
    return int(min(cap * 3 // 4, 100 * 1024 * 1024))


VMEM_LIMIT = _default_vmem_limit()


def _round_up(x, m):
    return (x + m - 1) // m * m


def _row_tiling(r):
    tile = min(TILE_R_MAX, _round_up(r, 8))
    return tile, _round_up(r, tile)


def _pad_rows(a, rp, axis=0):
    r = a.shape[axis]
    if rp == r:
        return a
    pads = [(0, 0)] * a.ndim
    pads[axis] = (0, rp - r)
    return jnp.pad(a, pads)


# ----------------------------- Pallas kernels ------------------------------

def _stem_kernel(p_ref, w_ref, b_ref, g_ref, beta_ref, o_ref):
    # patchify-conv (4x4 s4) as matmul + bias, fused with the stem per-pixel LayerNorm.
    x = jnp.dot(p_ref[...], w_ref[...], preferred_element_type=jnp.float32) + b_ref[...]
    mu = jnp.mean(x, axis=-1, keepdims=True)
    var = jnp.mean(jnp.square(x - mu), axis=-1, keepdims=True)
    o_ref[...] = ((x - mu) * jax.lax.rsqrt(var + LN_EPS) * g_ref[...]
                  + beta_ref[...]).astype(o_ref.dtype)


def _dwconv7_kernel(xp_ref, w_ref, b_ref, o_ref):
    # 7x7 depthwise conv (pad 3) on one image, channels on lanes.
    # W-offset (sublane) slices are hoisted out of the 49-tap loop (7 per row chunk instead
    # of 49) and the f32 accumulator is chunked over DW_TH output rows.
    xp = xp_ref[0]                              # (Hp, Wp, C) bf16
    hp, wp, c = xp.shape
    h, w = hp - 6, wp - 6
    wt = w_ref[...]                             # (49, 1, 1, C) f32
    b = b_ref[...]                              # (1, 1, C) f32
    for r0 in range(0, h, DW_TH):
        th = min(DW_TH, h - r0)
        acc = jnp.zeros((th, w, c), jnp.float32)
        for dj in range(7):
            col = xp[r0:r0 + th + 6, dj:dj + w, :]        # one misaligned slice per (chunk, dj)
            for di in range(7):
                acc = acc + col[di:di + th] * wt[di * 7 + dj]   # leading-axis slice: free
        o_ref[0, r0:r0 + th] = (acc + b).astype(o_ref.dtype)


def _block_mlp_kernel(y_ref, res_ref, lng_ref, lnb_ref, w1_ref, b1_ref,
                      w2_ref, b2_ref, gs_ref, o_ref):
    # LayerNorm -> Linear(C,4C) -> GELU -> Linear(4C,C) -> layerscale -> +residual, per row tile.
    y = y_ref[...].astype(jnp.float32)
    mu = jnp.mean(y, axis=-1, keepdims=True)
    var = jnp.mean(jnp.square(y - mu), axis=-1, keepdims=True)
    yn = (y - mu) * jax.lax.rsqrt(var + LN_EPS) * lng_ref[...] + lnb_ref[...]
    h = jnp.dot(yn.astype(jnp.bfloat16), w1_ref[...],
                preferred_element_type=jnp.float32) + b1_ref[...]
    h = jax.nn.gelu(h, approximate=True)
    h = jnp.dot(h.astype(jnp.bfloat16), w2_ref[...],
                preferred_element_type=jnp.float32) + b2_ref[...]
    o_ref[...] = (res_ref[...].astype(jnp.float32) + gs_ref[...] * h).astype(o_ref.dtype)


def _downsample_kernel(p_ref, g_ref, b_ref, w_ref, bias_ref, o_ref):
    # per-pixel LayerNorm fused with the 2x2 stride-2 conv (4 patch positions, K-slices of W).
    r = p_ref.shape[1]
    c2 = w_ref.shape[2]
    acc = jnp.zeros((r, c2), jnp.float32)
    for k in range(4):
        xk = p_ref[k].astype(jnp.float32)
        mu = jnp.mean(xk, axis=-1, keepdims=True)
        var = jnp.mean(jnp.square(xk - mu), axis=-1, keepdims=True)
        xn = (xk - mu) * jax.lax.rsqrt(var + LN_EPS) * g_ref[...] + b_ref[...]
        acc = acc + jnp.dot(xn.astype(jnp.bfloat16), w_ref[k],
                            preferred_element_type=jnp.float32)
    o_ref[...] = (acc + bias_ref[...]).astype(o_ref.dtype)


def _head_kernel(x_ref, g_ref, b_ref, w_ref, bias_ref, feat_ref, prob_ref):
    # GAP over spatial -> final LayerNorm -> feat ; prob = feat @ (BN-folded classifier W) + const.
    hw = x_ref.shape[0]
    x = jnp.sum(x_ref[...].astype(jnp.float32), axis=0) * (1.0 / hw)
    mu = jnp.mean(x, axis=-1, keepdims=True)
    var = jnp.mean(jnp.square(x - mu), axis=-1, keepdims=True)
    feat = (x - mu) * jax.lax.rsqrt(var + LN_EPS) * g_ref[...] + b_ref[...]
    feat_ref[...] = feat
    prob_ref[...] = jnp.dot(feat.astype(jnp.bfloat16), w_ref[...],
                            preferred_element_type=jnp.float32) + bias_ref[...]


# ------------------------------ jitted wrappers -----------------------------

@jax.jit
def stem_forward(x_nhwc, p):
    n, h, w, c = x_nhwc.shape
    ho, wo = h // 4, w // 4
    cs = p["w"].shape[1]
    patches = (x_nhwc.astype(jnp.bfloat16)
               .reshape(n, ho, 4, wo, 4, c)
               .transpose(0, 1, 3, 2, 4, 5)
               .reshape(n * ho * wo, 16 * c))
    r = n * ho * wo
    tile, rp = _row_tiling(r)
    patches = _pad_rows(patches, rp)
    out = pl.pallas_call(
        _stem_kernel,
        out_shape=jax.ShapeDtypeStruct((rp, cs), jnp.bfloat16),
        grid=(rp // tile,),
        in_specs=[
            pl.BlockSpec((tile, 16 * c), lambda i: (i, 0)),
            pl.BlockSpec((16 * c, cs), lambda i: (0, 0)),
            pl.BlockSpec((1, cs), lambda i: (0, 0)),
            pl.BlockSpec((1, cs), lambda i: (0, 0)),
            pl.BlockSpec((1, cs), lambda i: (0, 0)),
        ],
        out_specs=pl.BlockSpec((tile, cs), lambda i: (i, 0)),
        compiler_params=pltpu.CompilerParams(
            dimension_semantics=("parallel",), vmem_limit_bytes=VMEM_LIMIT),
    )(patches, p["w"], p["b"], p["ln_g"], p["ln_b"])
    return out[:r].reshape(n, ho, wo, cs)


@jax.jit
def convnext_block_forward(x, p):
    n, h, w, c = x.shape
    hp, wp = h + 6, w + 6
    # TODO(synk): the jnp.pad halo is one host-side HBM round trip per block; an in-kernel
    #             masked halo (Element-offset BlockSpec) would remove it.
    xp = jnp.pad(x, ((0, 0), (3, 3), (3, 3), (0, 0)))
    y = pl.pallas_call(
        _dwconv7_kernel,
        out_shape=jax.ShapeDtypeStruct((n, h, w, c), jnp.bfloat16),
        grid=(n,),
        in_specs=[
            pl.BlockSpec((1, hp, wp, c), lambda i: (i, 0, 0, 0)),
            pl.BlockSpec((49, 1, 1, c), lambda i: (0, 0, 0, 0)),
            pl.BlockSpec((1, 1, c), lambda i: (0, 0, 0)),
        ],
        out_specs=pl.BlockSpec((1, h, w, c), lambda i: (i, 0, 0, 0)),
        compiler_params=pltpu.CompilerParams(
            dimension_semantics=("parallel",), vmem_limit_bytes=VMEM_LIMIT),
    )(xp, p["dw_w"], p["dw_b"])

    r = n * h * w
    tile, rp = _row_tiling(r)
    yf = _pad_rows(y.reshape(r, c), rp)
    rf = _pad_rows(x.reshape(r, c), rp)
    c4 = p["w1"].shape[1]
    out = pl.pallas_call(
        _block_mlp_kernel,
        out_shape=jax.ShapeDtypeStruct((rp, c), jnp.bfloat16),
        grid=(rp // tile,),
        in_specs=[
            pl.BlockSpec((tile, c), lambda i: (i, 0)),
            pl.BlockSpec((tile, c), lambda i: (i, 0)),
            pl.BlockSpec((1, c), lambda i: (0, 0)),
            pl.BlockSpec((1, c), lambda i: (0, 0)),
            pl.BlockSpec((c, c4), lambda i: (0, 0)),
            pl.BlockSpec((1, c4), lambda i: (0, 0)),
            pl.BlockSpec((c4, c), lambda i: (0, 0)),
            pl.BlockSpec((1, c), lambda i: (0, 0)),
            pl.BlockSpec((1, c), lambda i: (0, 0)),
        ],
        out_specs=pl.BlockSpec((tile, c), lambda i: (i, 0)),
        compiler_params=pltpu.CompilerParams(
            dimension_semantics=("parallel",), vmem_limit_bytes=VMEM_LIMIT),
    )(yf, rf, p["ln_g"], p["ln_b"], p["w1"], p["b1"], p["w2"], p["b2"], p["gamma"])
    return out[:r].reshape(n, h, w, c)


@jax.jit
def downsample_forward(x, p):
    n, h, w, c = x.shape
    ho, wo = h // 2, w // 2
    c2 = p["w"].shape[2]
    r = n * ho * wo
    # TODO(synk): this patchify transpose is one extra HBM round trip; strided in-kernel
    #             reads (pl.ds stride=2) would remove it.
    patches = (x.reshape(n, ho, 2, wo, 2, c)
               .transpose(2, 4, 0, 1, 3, 5)
               .reshape(4, r, c))
    tile, rp = _row_tiling(r)
    patches = _pad_rows(patches, rp, axis=1)
    out = pl.pallas_call(
        _downsample_kernel,
        out_shape=jax.ShapeDtypeStruct((rp, c2), jnp.bfloat16),
        grid=(rp // tile,),
        in_specs=[
            pl.BlockSpec((4, tile, c), lambda i: (0, i, 0)),
            pl.BlockSpec((1, c), lambda i: (0, 0)),
            pl.BlockSpec((1, c), lambda i: (0, 0)),
            pl.BlockSpec((4, c, c2), lambda i: (0, 0, 0)),
            pl.BlockSpec((1, c2), lambda i: (0, 0)),
        ],
        out_specs=pl.BlockSpec((tile, c2), lambda i: (i, 0)),
        compiler_params=pltpu.CompilerParams(
            dimension_semantics=("parallel",), vmem_limit_bytes=VMEM_LIMIT),
    )(patches, p["ln_g"], p["ln_b"], p["w"], p["b"])
    return out[:r].reshape(n, ho, wo, c2)


@jax.jit
def head_forward(x, norm_p, cls_p):
    n, h, w, c = x.shape
    hw = h * w
    xt = x.reshape(n, hw, c).transpose(1, 0, 2)           # (HW, N, C) bf16
    npad = _round_up(max(n, 16), 16)                      # bf16 LHS packs 2 rows / sublane
    if npad > n:
        xt = jnp.pad(xt, ((0, 0), (0, npad - n), (0, 0)))
    cls_pad = cls_p["w"].shape[1]
    feat, prob = pl.pallas_call(
        _head_kernel,
        out_shape=(jax.ShapeDtypeStruct((npad, c), jnp.float32),
                   jax.ShapeDtypeStruct((npad, cls_pad), jnp.float32)),
        compiler_params=pltpu.CompilerParams(vmem_limit_bytes=VMEM_LIMIT),
    )(xt, norm_p["g"], norm_p["b"], cls_p["w"], cls_p["b"])
    return feat, prob


# ------------------------------- parameters ---------------------------------

def init_params(key, in_ch=3, num_classes=8, depths=DEPTHS, dims=DIMS):
    keys = iter(jax.random.split(key, 512))
    nk = lambda: next(keys)
    rnd = lambda shape, std: jax.random.normal(nk(), shape, jnp.float32) * std

    params = {
        "stem": dict(
            w=rnd((16 * in_ch, dims[0]), 0.02).astype(jnp.bfloat16),
            b=jnp.zeros((1, dims[0]), jnp.float32),
            ln_g=jnp.ones((1, dims[0]), jnp.float32),
            ln_b=jnp.zeros((1, dims[0]), jnp.float32)),
    }

    downs = []
    for i in range(3):
        c_in, c_out = dims[i], dims[i + 1]
        downs.append(dict(
            ln_g=jnp.ones((1, c_in), jnp.float32),
            ln_b=jnp.zeros((1, c_in), jnp.float32),
            w=rnd((4, c_in, c_out), 0.02).astype(jnp.bfloat16),
            b=jnp.zeros((1, c_out), jnp.float32)))
    params["down"] = downs

    stages = []
    for depth, c in zip(depths, dims):
        blocks = []
        for _ in range(depth):
            blocks.append(dict(
                dw_w=rnd((49, 1, 1, c), 0.02),
                dw_b=jnp.zeros((1, 1, c), jnp.float32),
                ln_g=jnp.ones((1, c), jnp.float32),
                ln_b=jnp.zeros((1, c), jnp.float32),
                w1=rnd((c, 4 * c), 0.02).astype(jnp.bfloat16),
                b1=jnp.zeros((1, 4 * c), jnp.float32),
                w2=rnd((4 * c, c), 0.02).astype(jnp.bfloat16),
                b2=jnp.zeros((1, c), jnp.float32),
                gamma=jnp.full((1, c), 1e-6, jnp.float32)))
        stages.append(blocks)
    params["stages"] = stages

    params["norm"] = dict(g=jnp.ones((1, dims[-1]), jnp.float32),
                          b=jnp.zeros((1, dims[-1]), jnp.float32))

    # classifier: BatchNorm1d(768) (gamma=1, beta=0 frozen, running stats) folded into the
    # bias-free Linear(768, num_classes) on the host -> one matmul + const bias.
    w_cls = rnd((num_classes, dims[-1]), 0.001)            # init.normal_(std=0.001)
    bn_g = jnp.ones((dims[-1],), jnp.float32)
    bn_b = jnp.zeros((dims[-1],), jnp.float32)
    bn_rm = jnp.zeros((dims[-1],), jnp.float32)
    bn_rv = jnp.ones((dims[-1],), jnp.float32)
    scale = bn_g * jax.lax.rsqrt(bn_rv + BN_EPS)
    shift = bn_b - bn_rm * scale
    w_fold = (w_cls * scale[None, :]).T                    # (768, num_classes)
    bias_fold = w_cls @ shift                              # (num_classes,)
    w_pad = jnp.zeros((dims[-1], CLS_PAD), jnp.float32).at[:, :num_classes].set(w_fold)
    b_pad = jnp.zeros((1, CLS_PAD), jnp.float32).at[0, :num_classes].set(bias_fold)
    params["cls"] = dict(w=w_pad.astype(jnp.bfloat16), b=b_pad)
    return params


# --------------------------------- forward ----------------------------------

def ft_net_inter_convnext_forward(x_nchw, params, num_classes):
    x = jnp.transpose(x_nchw, (0, 2, 3, 1)).astype(jnp.float32)   # NCHW -> NHWC
    n = x.shape[0]

    h = stem_forward(x, params["stem"])
    for i in range(4):
        if i > 0:
            h = downsample_forward(h, params["down"][i - 1])
        for blk in params["stages"][i]:
            h = convnext_block_forward(h, blk)

    feat, prob_pad = head_forward(h, params["norm"], params["cls"])
    prob = prob_pad[:n, :num_classes]
    feat = feat[:n]
    # x = x.view(N, 768) in the PyTorch module is a no-op here (feat is already (N, 768)).
    return prob, feat


# ----------------------------------- main ------------------------------------

if __name__ == "__main__":
    num_classes = 8
    N, C, H, W = 2, 3, 32, 32          # spatial must be divisible by 32 (stem 4x + 3 downsamples 2x)

    key = jax.random.PRNGKey(0)
    kx, kp = jax.random.split(key)
    x = jax.random.normal(kx, (N, C, H, W), jnp.float32)
    params = init_params(kp, in_ch=C, num_classes=num_classes)

    prob, feat = ft_net_inter_convnext_forward(x, params, num_classes)
    prob = jax.block_until_ready(prob)
    feat = jax.block_until_ready(feat)

    assert prob.shape == (N, num_classes)
    assert feat.shape == (N, DIMS[-1])
    assert bool(jnp.all(jnp.isfinite(prob))) and bool(jnp.all(jnp.isfinite(feat)))
    print("KERNEL_OK")
</pallas_src>

<mosaic_0001>
module attributes {stable_mosaic.version = 11 : i64} {
  func.func @_stem_kernel(%arg0: i32, %arg1: memref<128x48xbf16, #tpu.memory_space<vmem>>, %arg2: memref<48x96xbf16, #tpu.memory_space<vmem>>, %arg3: memref<1x96xf32, #tpu.memory_space<vmem>>, %arg4: memref<1x96xf32, #tpu.memory_space<vmem>>, %arg5: memref<1x96xf32, #tpu.memory_space<vmem>>, %arg6: memref<128x96xbf16, #tpu.memory_space<vmem>>) attributes {dimension_semantics = [#tpu.dimension_semantics<parallel>], iteration_bounds = array<i64: 1>, scalar_prefetch = 0 : i64, scratch_operands = 0 : i64, tpu.core_type = #tpu.core_type<tc>, window_params = [{transform_indices = @transform_0, window_bounds = array<i64: 128, 48>}, {pipeline_mode = #tpu.pipeline_mode<synchronous>, transform_indices = @transform_1, window_bounds = array<i64: 48, 96>}, {pipeline_mode = #tpu.pipeline_mode<synchronous>, transform_indices = @transform_2, window_bounds = array<i64: 1, 96>}, {pipeline_mode = #tpu.pipeline_mode<synchronous>, transform_indices = @transform_3, window_bounds = array<i64: 1, 96>}, {pipeline_mode = #tpu.pipeline_mode<synchronous>, transform_indices = @transform_4, window_bounds = array<i64: 1, 96>}, {transform_indices = @transform_5, window_bounds = array<i64: 128, 96>}]} {
    %c0 = arith.constant 0 : index
    %c0_0 = arith.constant 0 : index
    %0 = vector.load %arg1[%c0, %c0_0] : memref<128x48xbf16, #tpu.memory_space<vmem>>, vector<128x48xbf16>
    %c0_1 = arith.constant 0 : index
    %c0_2 = arith.constant 0 : index
    %1 = vector.load %arg2[%c0_1, %c0_2] : memref<48x96xbf16, #tpu.memory_space<vmem>>, vector<48x96xbf16>
    %cst = arith.constant dense<0.000000e+00> : vector<128x96xf32>
    %2 = tpu.matmul %0, %1, %cst {dimension_numbers = #tpu.dot_dimension_numbers<[1], [0], [0], [1], [0, 0, 1, 1], [], []>} : vector<128x48xbf16>, vector<48x96xbf16>, vector<128x96xf32> -> vector<128x96xf32>
    %c0_3 = arith.constant 0 : index
    %c0_4 = arith.constant 0 : index
    %3 = vector.load %arg3[%c0_3, %c0_4] : memref<1x96xf32, #tpu.memory_space<vmem>>, vector<1x96xf32>
    %4 = vector.broadcast %3 : vector<1x96xf32> to vector<128x96xf32>
    %5 = arith.addf %2, %4 : vector<128x96xf32>
    %cst_5 = arith.constant dense<0.000000e+00> : vector<128xf32>
    %6 = vector.multi_reduction <add>, %5, %cst_5 [1] : vector<128x96xf32> to vector<128xf32>
    %7 = vector.shape_cast %6 : vector<128xf32> to vector<128x1xf32>
    %cst_6 = arith.constant 9.600000e+01 : f32
    %8 = vector.broadcast %cst_6 : f32 to vector<128x1xf32>
    %9 = arith.divf %7, %8 : vector<128x1xf32>
    %10 = vector.broadcast %9 : vector<128x1xf32> to vector<128x96xf32>
    %11 = arith.subf %5, %10 : vector<128x96xf32>
    %12 = arith.mulf %11, %11 : vector<128x96xf32>
    %cst_7 = arith.constant dense<0.000000e+00> : vector<128xf32>
    %13 = vector.multi_reduction <add>, %12, %cst_7 [1] : vector<128x96xf32> to vector<128xf32>
    %14 = vector.shape_cast %13 : vector<128xf32> to vector<128x1xf32>
    %cst_8 = arith.constant 9.600000e+01 : f32
    %15 = vector.broadcast %cst_8 : f32 to vector<128x1xf32>
    %16 = arith.divf %14, %15 : vector<128x1xf32>
    %17 = vector.broadcast %9 : vector<128x1xf32> to vector<128x96xf32>
    %18 = arith.subf %5, %17 : vector<128x96xf32>
    %cst_9 = arith.constant 9.99999997E-7 : f32
    %19 = vector.broadcast %cst_9 : f32 to vector<128x1xf32>
    %20 = arith.addf %16, %19 : vector<128x1xf32>
    %21 = math.rsqrt %20 : vector<128x1xf32>
    %22 = vector.broadcast %21 : vector<128x1xf32> to vector<128x96xf32>
    %23 = arith.mulf %18, %22 : vector<128x96xf32>
    %c0_10 = arith.constant 0 : index
    %c0_11 = arith.constant 0 : index
    %24 = vector.load %arg4[%c0_10, %c0_11] : memref<1x96xf32, #tpu.memory_space<vmem>>, vector<1x96xf32>
    %25 = vector.broadcast %24 : vector<1x96xf32> to vector<128x96xf32>
    %26 = arith.mulf %23, %25 : vector<128x96xf32>
    %c0_12 = arith.constant 0 : index
    %c0_13 = arith.constant 0 : index
    %27 = vector.load %arg5[%c0_12, %c0_13] : memref<1x96xf32, #tpu.memory_space<vmem>>, vector<1x96xf32>
    %28 = vector.broadcast %27 : vector<1x96xf32> to vector<128x96xf32>
    %29 = arith.addf %26, %28 : vector<128x96xf32>
    %30 = arith.truncf %29 : vector<128x96xf32> to vector<128x96xbf16>
    %c0_14 = arith.constant 0 : index
    %c0_15 = arith.constant 0 : index
    %31 = vector.load %arg6[%c0_14, %c0_15] : memref<128x96xbf16, #tpu.memory_space<vmem>>, vector<128x96xbf16>
    tpu.vector_store %arg6[%c0_14, %c0_15], %30 {strides = array<i32>} : memref<128x96xbf16, #tpu.memory_space<vmem>>, vector<128x96xbf16>,
    return
  }
  func.func @transform_0(%arg0: i32) -> (i32, i32) {
    %c0_i32 = arith.constant 0 : i32
    %c0_i32_0 = arith.constant 0 : i32
    return %arg0, %c0_i32 : i32, i32
  }
  func.func @transform_1(%arg0: i32) -> (i32, i32) {
    %c0_i32 = arith.constant 0 : i32
    %c0_i32_0 = arith.constant 0 : i32
    %c0_i32_1 = arith.constant 0 : i32
    return %c0_i32, %c0_i32_0 : i32, i32
  }
  func.func @transform_2(%arg0: i32) -> (i32, i32) {
    %c0_i32 = arith.constant 0 : i32
    %c0_i32_0 = arith.constant 0 : i32
    %c0_i32_1 = arith.constant 0 : i32
    return %c0_i32, %c0_i32_0 : i32, i32
  }
  func.func @transform_3(%arg0: i32) -> (i32, i32) {
    %c0_i32 = arith.constant 0 : i32
    %c0_i32_0 = arith.constant 0 : i32
    %c0_i32_1 = arith.constant 0 : i32
    return %c0_i32, %c0_i32_0 : i32, i32
  }
  func.func @transform_4(%arg0: i32) -> (i32, i32) {
    %c0_i32 = arith.constant 0 : i32
    %c0_i32_0 = arith.constant 0 : i32
    %c0_i32_1 = arith.constant 0 : i32
    return %c0_i32, %c0_i32_0 : i32, i32
  }
  func.func @transform_5(%arg0: i32) -> (i32, i32) {
    %c0_i32 = arith.constant 0 : i32
    %c0_i32_0 = arith.constant 0 : i32
    return %arg0, %c0_i32 : i32, i32
  }
}

</mosaic_0001>

<bundles_post_ra>
// kernel: stem_forward.1
= control target key start
LH: loop header
LB: loop body
LE: loop exit
PB: predicated region body
PF: predicated region fallthrough
CT: control target
= control target key end

     0   :  { %vm109_vm0 = vcmask 392192   ;;  %s1055_s0 = inlined_call_operand.vmem [shape: bf16[128,48], index: 0, kind: input, shape index: {}]   ;;  %s1056_s1 = inlined_call_operand.vmem [shape: bf16[48,96], index: 1, kind: input, shape index: {}]   ;;  %s1057_s2 = inlined_call_operand.vmem [shape: f32[1,96], index: 2, kind: input, shape index: {}]   ;;  %s1058_s3 = inlined_call_operand.vmem [shape: f32[1,96], index: 3, kind: input, shape index: {}]   ;;  %s1059_s4 = inlined_call_operand.vmem [shape: f32[1,96], index: 4, kind: input, shape index: {}]   ;;  %s1060_s5 = inlined_call_operand.hbm [shape: bf16[128,96], index: 5, kind: output, shape index: {}]  }
   0x1   :  { %v680_v0 = vld [vmem:[%s1056_s1 + $0x10] sm:$0xff]   ;;  %v681_v1 = vld [vmem:[%s1056_s1 + $0x8] sm:$0xff]   ;;  %v682_v2 = vld [vmem:[%s1056_s1] sm:$0xff]  }
   0x2   :  { %649 = vmatprep.subr.bf16.mxu0 %v680_v0  ;;  %671 = vmatprep.subr.bf16.mxu1 %v680_v0  ;;  %v683_v3 = vld [vmem:[%s1055_s0] sm:$0xff]   ;;  %v685_v5 = vld [vmem:[%s1055_s0 + $0x8] sm:$0xff]   ;;  %v687_v7 = vld [vmem:[%s1055_s0 + $0x10] sm:$0xff]  }
   0x3   :  { %650 = vmatpush3.bf16.msra.mxu0 %v680_v0  ;;  %674 = vmatpush3.bf16.msra.mxu1 %v680_v0  ;;  %v684_v4 = vld [vmem:[%s1055_s0 + $0x20] sm:$0xff]   ;;  %v686_v6 = vld [vmem:[%s1055_s0 + $0x28] sm:$0xff]   ;;  %v689_v8 = vld [vmem:[%s1055_s0 + $0x30] sm:$0xff]  }
   0x4   :  { %651 = vmatprep.subr.bf16.mxu0 %v681_v1  ;;  %672 = vmatprep.subr.bf16.mxu1 %v681_v1 }
   0x5   :  { %655 = vmatprep.mubr.msk.bf16.mxu0 %vm109_vm0, %v683_v3  ;;  %663 = vmatprep.mubr.msk.bf16.mxu1 %vm109_vm0, %v684_v4 }
   0x7   :  { %652 = vmatpush3.bf16.msra.mxu0 %v681_v1  ;;  %675 = vmatpush3.bf16.msra.mxu1 %v681_v1 }
   0x8   :  { %653 = vmatprep.subr.bf16.mxu0 %v682_v2  ;;  %673 = vmatprep.subr.bf16.mxu1 %v682_v2 }
   0xb   :  { %654 = vmatpush3.bf16.msra.mxu0 %v682_v2  ;;  %676 = vmatpush3.bf16.msra.mxu1 %v682_v2 }
   0xc   :  { %10 = vsyncpa [#allocation3], 0  ;;  %v688_v9 = vld [vmem:[%s1055_s0 + $0x18] sm:$0xff]   ;;  %v584_v11 = vld [vmem:[%s1057_s2] ss:$0 sm:$0xff]  ;;  %vm231_vm1 = vcmask 785408  }
   0xd   :  { %v690_v10 = vld [vmem:[%s1055_s0 + $0x38] sm:$0xff]   ;;  %vm551_vm2 = vcmask 781312  }
   0xe   :  { %656 = vmatmul.mubr.msk.bf16.vlgmr.msra.gmra.mxu0 %vm109_vm0, %v685_v5  ;;  %664 = vmatmul.mubr.msk.bf16.vlgmr.msra.gmra.mxu1 %vm109_vm0, %v686_v6 }
   0xf   :  { %659 = vmatprep.mubr.msk.bf16.mxu0 %vm109_vm0, %v687_v7  ;;  %667 = vmatprep.mubr.msk.bf16.mxu1 %vm109_vm0, %v689_v8 }
  0x16   :  { %660 = vmatmul.mubr.msk.bf16.gmra.mxu0 %vm109_vm0, %v688_v9  ;;  %668 = vmatmul.mubr.msk.bf16.gmra.mxu1 %vm109_vm0, %v690_v10 }
  0xce   :  { %v657_v12 = vpop.f32.mrf.mxu0  ;;  %v665_v13 = vpop.f32.mrf.mxu1 }
  0xcf   :  { %v822_v14 = vadd.f32 %v657_v12, %v584_v11  ;;  %v824_v15 = vadd.f32 %v665_v13, %v584_v11 }
  0xd0   :  { %v168_v16 = vpop.f32.mrf.mxu0  ;;  %v200_v17 = vpop.f32.mrf.mxu1 }
  0xd1   :  { %v826_v18 = vadd.f32 %v584_v11, %v168_v16  ;;  %v262_v19 = vsel %vm231_vm1, %v824_v15, 0.0  ;;  %v238_v20 = vsel %vm231_vm1, %v822_v14, 0.0  ;;  %v832_v26 = vadd.f32 %v584_v11, %v200_v17 }
  0xd2   :  { %263 = vadd.xlane.f32.xlu0 %v262_v19  ;;  %v666_v21 = vpop.f32.mrf.mxu1  ;;  %239 = vadd.xlane.f32.xlu1 %v238_v20  ;;  %v658_v22 = vpop.f32.mrf.mxu0 }
  0xd3   :  { %v180_v23 = vadd.f32 %v658_v22, %v584_v11  ;;  %v834_v27 = vadd.f32 %v666_v21, %v584_v11  ;;  %v232_v29 = vsel %vm231_vm1, %v826_v18, 0.0  ;;  %v256_v36 = vsel %vm231_vm1, %v832_v26, 0.0 }
  0xd4   :  { %v171_v24 = vpop.f32.mrf.mxu0  ;;  %v203_v25 = vpop.f32.mrf.mxu1 }
  0xd5   :  { %v241_v28 = vsel %vm231_vm1, %v180_v23, 0.0  ;;  %v839_v33 = vadd.f32 %v584_v11, %v171_v24  ;;  %v841_v34 = vadd.f32 %v584_v11, %v203_v25  ;;  %v265_v35 = vsel %vm231_vm1, %v834_v27, 0.0 }
  0xd6   :  { %242 = vadd.xlane.f32.xlu1 %v241_v28  ;;  %233 = vadd.xlane.f32.xlu0 %v232_v29  ;;  %v661_v30 = vpop.f32.mrf.mxu0  ;;  %v669_v31 = vpop.f32.mrf.mxu1 }
  0xd7   :  { %v847_v39 = vadd.f32 %v661_v30, %v584_v11  ;;  %v259_v41 = vsel %vm231_vm1, %v841_v34, 0.0  ;;  %v235_v42 = vsel %vm231_vm1, %v839_v33, 0.0  ;;  %v871_v54 = vadd.f32 %v669_v31, %v584_v11 }
  0xd8   :  { %v184_v32 = vpop.f32.mrf.mxu0  ;;  %v216_v38 = vpop.f32.mrf.mxu1 }
  0xd9   :  { %v250_v46 = vsel %vm231_vm1, %v847_v39, 0.0  ;;  %v859_v47 = vadd.f32 %v584_v11, %v184_v32  ;;  %v863_v50 = vadd.f32 %v584_v11, %v216_v38  ;;  %v274_v59 = vsel %vm231_vm1, %v871_v54, 0.0 }
  0xda   :  { %266 = vadd.xlane.f32.xlu1 %v265_v35  ;;  %257 = vadd.xlane.f32.xlu0 %v256_v36  ;;  %v662_v37 = vpop.f32.mrf.mxu0  ;;  %v670_v44 = vpop.f32.mrf.mxu1 }
  0xdb   :  { %v849_v40 = vadd.f32 %v662_v37, %v584_v11  ;;  %v244_v53 = vsel %vm231_vm1, %v859_v47, 0.0  ;;  %v873_v55 = vadd.f32 %v670_v44, %v584_v11  ;;  %v268_v57 = vsel %vm231_vm1, %v863_v50, 0.0 }
  0xdc   :  { %v187_v43 = vpop.f32.mrf.mxu0  ;;  %v219_v49 = vpop.f32.mrf.mxu1 }
  0xdd   :  { %v253_v45 = vsel %vm231_vm1, %v849_v40, 0.0  ;;  %v861_v48 = vadd.f32 %v584_v11, %v187_v43  ;;  %v865_v51 = vadd.f32 %v584_v11, %v219_v49  ;;  %v277_v58 = vsel %vm231_vm1, %v873_v55, 0.0 }
  0xde   :  { %260 = vadd.xlane.f32.xlu1 %v259_v41  ;;  %236 = vadd.xlane.f32.xlu0 %v235_v42 }
  0xdf   :  { %v247_v52 = vsel %vm231_vm1, %v861_v48, 0.0  ;;  %v271_v56 = vsel %vm231_vm1, %v865_v51, 0.0 }
  0xe2   :  { %254 = vadd.xlane.f32.xlu1 %v253_v45  ;;  %251 = vadd.xlane.f32.xlu0 %v250_v46 }
  0xe6   :  { %248 = vadd.xlane.f32.xlu1 %v247_v52  ;;  %245 = vadd.xlane.f32.xlu0 %v244_v53 }
  0xea   :  { %272 = vadd.xlane.f32.xlu1 %v271_v56  ;;  %269 = vadd.xlane.f32.xlu0 %v268_v57 }
  0xee   :  { %278 = vadd.xlane.f32.xlu1 %v277_v58  ;;  %275 = vadd.xlane.f32.xlu0 %v274_v59 }
 0x15b   :  { %v264_v60 = vpop.xlane.xlu0 %263  ;;  %v240_v61 = vpop.xlane.xlu1 %239 }
 0x15c   :  { %v291_v62 = vmul.f32 0.010416667, %v264_v60  ;;  %v283_v63 = vmul.f32 0.010416667, %v240_v61 }
 0x15e   :  { %v884_v0 = vsub.f32 %v824_v15, %v291_v62  ;;  %v887_v1 = vsub.f32 %v822_v14, %v283_v63 }
 0x15f   :  { %v243_v2 = vpop.xlane.xlu1 %242  ;;  %v234_v3 = vpop.xlane.xlu0 %233 }
 0x160   :  { %v284_v4 = vmul.f32 0.010416667, %v243_v2  ;;  %v281_v5 = vmul.f32 0.010416667, %v234_v3  ;;  %v315_v6 = vmul.f32 %v887_v1, %v887_v1  ;;  %v323_v10 = vmul.f32 %v884_v0, %v884_v0 }
 0x162   :  { %v891_v7 = vsub.f32 %v180_v23, %v284_v4  ;;  %v894_v8 = vsub.f32 %v826_v18, %v281_v5  ;;  %v335_v9 = vsel %vm231_vm1, %v315_v6, 0.0  ;;  %v359_v20 = vsel %vm231_vm1, %v323_v10, 0.0 }
 0x163   :  { %v267_v11 = vpop.xlane.xlu1 %266  ;;  %336 = vadd.xlane.f32.xlu0 %v335_v9  ;;  %v258_v12 = vpop.xlane.xlu0 %257 }
 0x164   :  { %v292_v13 = vmul.f32 0.010416667, %v267_v11  ;;  %v289_v14 = vmul.f32 0.010416667, %v258_v12  ;;  %v316_v15 = vmul.f32 %v891_v7, %v891_v7  ;;  %v313_v16 = vmul.f32 %v894_v8, %v894_v8 }
 0x166   :  { %v904_v17 = vsub.f32 %v834_v27, %v292_v13  ;;  %v907_v18 = vsub.f32 %v832_v26, %v289_v14  ;;  %v338_v19 = vsel %vm231_vm1, %v316_v15, 0.0  ;;  %v329_v28 = vsel %vm231_vm1, %v313_v16, 0.0 }
 0x167   :  { %v261_v21 = vpop.xlane.xlu1 %260  ;;  %339 = vadd.xlane.f32.xlu1 %v338_v19  ;;  %360 = vadd.xlane.f32.xlu0 %v359_v20  ;;  %v237_v22 = vpop.xlane.xlu0 %236 }
 0x168   :  { %v290_v23 = vmul.f32 0.010416667, %v261_v21  ;;  %v282_v24 = vmul.f32 0.010416667, %v237_v22  ;;  %v324_v25 = vmul.f32 %v904_v17, %v904_v17  ;;  %v321_v30 = vmul.f32 %v907_v18, %v907_v18 }
 0x16a   :  { %v915_v27 = vsub.f32 %v841_v34, %v290_v23  ;;  %v918_v26 = vsub.f32 %v839_v33, %v282_v24  ;;  %v362_v29 = vsel %vm231_vm1, %v324_v25, 0.0  ;;  %v353_v41 = vsel %vm231_vm1, %v321_v30, 0.0 }
 0x16b   :  { %v255_v31 = vpop.xlane.xlu1 %254  ;;  %363 = vadd.xlane.f32.xlu1 %v362_v29  ;;  %330 = vadd.xlane.f32.xlu0 %v329_v28  ;;  %v252_v32 = vpop.xlane.xlu0 %251 }
 0x16c   :  { %v288_v35 = vmul.f32 0.010416667, %v255_v31  ;;  %v287_v36 = vmul.f32 0.010416667, %v252_v32  ;;  %v314_v37 = vmul.f32 %v918_v26, %v918_v26  ;;  %v322_v34 = vmul.f32 %v915_v27, %v915_v27 }
 0x16e   :  { %v928_v33 = vsub.f32 %v849_v40, %v288_v35  ;;  %v931_v38 = vsub.f32 %v847_v39, %v287_v36  ;;  %v332_v42 = vsel %vm231_vm1, %v314_v37, 0.0  ;;  %v356_v52 = vsel %vm231_vm1, %v322_v34, 0.0 }
 0x16f   :  { %v249_v43 = vpop.xlane.xlu1 %248  ;;  %354 = vadd.xlane.f32.xlu0 %v353_v41  ;;  %333 = vadd.xlane.f32.xlu1 %v332_v42  ;;  %v246_v44 = vpop.xlane.xlu0 %245 }
 0x170   :  { %v286_v45 = vmul.f32 0.010416667, %v249_v43  ;;  %v285_v46 = vmul.f32 0.010416667, %v246_v44  ;;  %v319_v49 = vmul.f32 %v931_v38, %v931_v38  ;;  %v320_v56 = vmul.f32 %v928_v33, %v928_v33 }
 0x172   :  { %v939_v40 = vsub.f32 %v861_v48, %v286_v45  ;;  %v942_v39 = vsub.f32 %v859_v47, %v285_v46  ;;  %v347_v53 = vsel %vm231_vm1, %v319_v49, 0.0  ;;  %v350_v63 = vsel %vm231_vm1, %v320_v56, 0.0  ;;  %v981_v56 = vld [vmem:[%s1058_s3] ss:$0 sm:$0xff]  ;;  %s745_s3 = smov [#allocation2]  }
 0x173   :  { %v273_v57 = vpop.xlane.xlu1 %272  ;;  %357 = vadd.xlane.f32.xlu1 %v356_v52  ;;  %348 = vadd.xlane.f32.xlu0 %v347_v53  ;;  %v270_v58 = vpop.xlane.xlu0 %269 }
 0x174   :  { %v294_v59 = vmul.f32 0.010416667, %v273_v57  ;;  %v293_v60 = vmul.f32 0.010416667, %v270_v58  ;;  %v317_v61 = vmul.f32 %v942_v39, %v942_v39  ;;  %v318_v48 = vmul.f32 %v939_v40, %v939_v40 }
 0x176   :  { %v952_v47 = vsub.f32 %v865_v51, %v294_v59  ;;  %v955_v62 = vsub.f32 %v863_v50, %v293_v60  ;;  %v341_v2 = vsel %vm231_vm1, %v317_v61, 0.0  ;;  %v344_v10 = vsel %vm231_vm1, %v318_v48, 0.0  ;;  %v987_v60 = vld [vmem:[%s1059_s4] ss:$0 sm:$0xff]  ;;  %s573_s4 = sshll.u32 %s745_s3, 4  ;;  %s574_s4 = int_to_ptr.vmem [resolvable:$true] %s573_s4 }
 0x177   :  { %v279_v3 = vpop.xlane.xlu1 %278  ;;  %351 = vadd.xlane.f32.xlu1 %v350_v63  ;;  %342 = vadd.xlane.f32.xlu0 %v341_v2  ;;  %v276_v4 = vpop.xlane.xlu0 %275  ;;  %s723_s18 = scalar_lea.vmem %s574_s4, 1024  ;;  %p728_p1 = scmp.lt.s32.totalorder %s574_s4, %s574_s4 }
 0x178   :  { %v296_v5 = vmul.f32 0.010416667, %v279_v3  ;;  %v295_v6 = vmul.f32 0.010416667, %v276_v4  ;;  %v325_v9 = vmul.f32 %v955_v62, %v955_v62  ;;  %v326_v12 = vmul.f32 %v952_v47, %v952_v47  ;;  %p724_p0 = scmp.ne.s32.totalorder %s574_s4, %s723_s18  ;;  %p729_p2 = scmp.lt.s32.totalorder %s723_s18, %s723_s18 }
 0x17a   :  { %v963_v51 = vsub.f32 %v873_v55, %v296_v5  ;;  %v966_v50 = vsub.f32 %v871_v54, %v295_v6  ;;  %v365_v11 = vsel %vm231_vm1, %v325_v9, 0.0  ;;  %v368_v14 = vsel %vm231_vm1, %v326_v12, 0.0  ;;  %p730_p3 = por %p729_p2, %p728_p1 }
 0x17b   :  { %345 = vadd.xlane.f32.xlu1 %v344_v10  ;;  %366 = vadd.xlane.f32.xlu0 %v365_v11 }
 0x17c   :  { %v327_v13 = vmul.f32 %v966_v50, %v966_v50  ;;  %v328_v55 = vmul.f32 %v963_v51, %v963_v51  ;;  %p731_p4 = pnand %p730_p3, %p724_p0 }
 0x17e   :  { %v371_v15 = vsel %vm231_vm1, %v327_v13, 0.0  ;;  %v374_v54 = vsel %vm231_vm1, %v328_v55, 0.0 }
 0x17f   :  { %369 = vadd.xlane.f32.xlu1 %v368_v14  ;;  %372 = vadd.xlane.f32.xlu0 %v371_v15 }
 0x183   :  { %375 = vadd.xlane.f32.xlu1 %v374_v54 }
 0x1ec   :  { %v337_v16 = vpop.xlane.xlu0 %336 }
 0x1ed   :  { %v379_v19 = vmul.f32 0.010416667, %v337_v16 }
 0x1ef   :  { %v395_v20 = vadd.f32 1e-06, %v379_v19 }
 0x1f0   :  { %v340_v21 = vpop.xlane.xlu1 %339  ;;  %v361_v22 = vpop.xlane.xlu0 %360 }
 0x1f1   :  { %691 = vrsqrt.f32 %v395_v20  ;;  %v380_v23 = vmul.f32 0.010416667, %v340_v21  ;;  %v387_v24 = vmul.f32 0.010416667, %v361_v22 }
 0x1f3   :  { %v396_v25 = vadd.f32 1e-06, %v380_v23  ;;  %v403_v28 = vadd.f32 1e-06, %v387_v24 }
 0x1f4   :  { %v364_v29 = vpop.xlane.xlu1 %363  ;;  %v331_v30 = vpop.xlane.xlu0 %330 }
 0x1f5   :  { %693 = vrsqrt.f32 %v396_v25  ;;  %v388_v31 = vmul.f32 0.010416667, %v364_v29  ;;  %v377_v32 = vmul.f32 0.010416667, %v331_v30 }
 0x1f6   :  { %695 = vrsqrt.f32 %v403_v28 }
 0x1f7   :  { %v404_v35 = vadd.f32 1e-06, %v388_v31  ;;  %v393_v36 = vadd.f32 1e-06, %v377_v32 }
 0x1f8   :  { %v334_v37 = vpop.xlane.xlu1 %333  ;;  %v355_v34 = vpop.xlane.xlu0 %354 }
 0x1f9   :  { %697 = vrsqrt.f32 %v404_v35  ;;  %v378_v41 = vmul.f32 0.010416667, %v334_v37  ;;  %v385_v42 = vmul.f32 0.010416667, %v355_v34 }
 0x1fa   :  { %699 = vrsqrt.f32 %v393_v36 }
 0x1fb   :  { %v394_v43 = vadd.f32 1e-06, %v378_v41  ;;  %v401_v44 = vadd.f32 1e-06, %v385_v42 }
 0x1fc   :  { %v358_v45 = vpop.xlane.xlu1 %357  ;;  %v349_v46 = vpop.xlane.xlu0 %348 }
 0x1fd   :  { %701 = vrsqrt.f32 %v394_v43  ;;  %v386_v49 = vmul.f32 0.010416667, %v358_v45  ;;  %v383_v52 = vmul.f32 0.010416667, %v349_v46 }
 0x1fe   :  { %v692_v53 = vpop.eup %691  ;;  %703 = vrsqrt.f32 %v401_v44 }
 0x1ff   :  { %v427_v57 = vmul.f32 %v692_v53, %v887_v1  ;;  %v402_v58 = vadd.f32 1e-06, %v386_v49  ;;  %v399_v59 = vadd.f32 1e-06, %v383_v52 }
 0x200   :  { %v352_v61 = vpop.xlane.xlu1 %351  ;;  %v343_v48 = vpop.xlane.xlu0 %342 }
 0x201   :  { %v450_v63 = vmul.f32 %v981_v56, %v427_v57  ;;  %705 = vrsqrt.f32 %v402_v58  ;;  %v384_v2 = vmul.f32 0.010416667, %v352_v61  ;;  %v381_v3 = vmul.f32 0.010416667, %v343_v48 }
 0x202   :  { %v694_v4 = vpop.eup %693  ;;  %707 = vrsqrt.f32 %v399_v59 }
 0x203   :  { %v696_v5 = vpop.eup %695  ;;  %v473_v6 = vadd.f32 %v987_v60, %v450_v63  ;;  %v428_v1 = vmul.f32 %v694_v4, %v891_v7  ;;  %v400_v9 = vadd.f32 1e-06, %v384_v2  ;;  %v397_v10 = vadd.f32 1e-06, %v381_v3 }
 0x204   :  { %v435_v11 = vmul.f32 %v696_v5, %v884_v0  ;;  %v346_v12 = vpop.xlane.xlu1 %345  ;;  %v367_v13 = vpop.xlane.xlu0 %366 }
 0x205   :  { %v624_v14 = vpack.c.bf16 %v473_v6, %v473_v6  ;;  %v451_v15 = vmul.f32 %v981_v56, %v428_v1  ;;  %709 = vrsqrt.f32 %v400_v9  ;;  %v382_v55 = vmul.f32 0.010416667, %v346_v12 }
 0x206   :  { %v698_v54 = vpop.eup %697  ;;  %v458_v16 = vmul.f32 %v981_v56, %v435_v11  ;;  %711 = vrsqrt.f32 %v397_v10  ;;  %v389_v19 = vmul.f32 0.010416667, %v367_v13 }
 0x207   :  { %v700_v20 = vpop.eup %699  ;;  %554 = vst.msk [vmem:[#allocation2 + $0x8] sm:$0xf] %vm551_vm2, %v624_v14  ;;  %v474_v7 = vadd.f32 %v987_v60, %v451_v15  ;;  %v436_v21 = vmul.f32 %v698_v54, %v904_v17  ;;  %v398_v0 = vadd.f32 1e-06, %v382_v55 }
 0x208   :  { %v481_v22 = vadd.f32 %v987_v60, %v458_v16  ;;  %v425_v23 = vmul.f32 %v700_v20, %v894_v8  ;;  %v405_v24 = vadd.f32 1e-06, %v389_v19  ;;  %v370_v25 = vpop.xlane.xlu1 %369  ;;  %v373_v28 = vpop.xlane.xlu0 %372 }
 0x209   :  { %v625_v29 = vpack.c.bf16 %v474_v7, %v474_v7  ;;  %v459_v30 = vmul.f32 %v981_v56, %v436_v21  ;;  %713 = vrsqrt.f32 %v398_v0  ;;  %v390_v31 = vmul.f32 0.010416667, %v370_v25 }
 0x20a   :  { %v702_v32 = vpop.eup %701  ;;  %v632_v35 = vpack.c.bf16 %v481_v22, %v481_v22  ;;  %v448_v36 = vmul.f32 %v981_v56, %v425_v23  ;;  %715 = vrsqrt.f32 %v405_v24  ;;  %v391_v37 = vmul.f32 0.010416667, %v373_v28 }
 0x20b   :  { %v704_v17 = vpop.eup %703  ;;  %555 = vst.msk [vmem:[#allocation2 + $0xc] sm:$0xf] %vm551_vm2, %v625_v29  ;;  %v482_v34 = vadd.f32 %v987_v60, %v459_v30  ;;  %v426_v8 = vmul.f32 %v702_v32, %v918_v26  ;;  %v406_v41 = vadd.f32 1e-06, %v390_v31 }
 0x20c   :  { %562 = vst.msk [vmem:[#allocation2 + $0x28] sm:$0xf] %vm551_vm2, %v632_v35  ;;  %v471_v42 = vadd.f32 %v987_v60, %v448_v36  ;;  %v433_v43 = vmul.f32 %v704_v17, %v907_v18  ;;  %v407_v44 = vadd.f32 1e-06, %v391_v37  ;;  %v376_v45 = vpop.xlane.xlu1 %375 }
 0x20d   :  { %v633_v46 = vpack.c.bf16 %v482_v34, %v482_v34  ;;  %v449_v49 = vmul.f32 %v981_v56, %v426_v8  ;;  %717 = vrsqrt.f32 %v406_v41  ;;  %v392_v52 = vmul.f32 0.010416667, %v376_v45 }
 0x20e   :  { %v706_v53 = vpop.eup %705  ;;  %v622_v57 = vpack.c.bf16 %v471_v42, %v471_v42  ;;  %v456_v58 = vmul.f32 %v981_v56, %v433_v43  ;;  %719 = vrsqrt.f32 %v407_v44 }
 0x20f   :  { %v708_v26 = vpop.eup %707  ;;  %563 = vst.msk [vmem:[#allocation2 + $0x2c] sm:$0xf] %vm551_vm2, %v633_v46  ;;  %v472_v59 = vadd.f32 %v987_v60, %v449_v49  ;;  %v434_v61 = vmul.f32 %v706_v53, %v915_v27  ;;  %v408_v18 = vadd.f32 1e-06, %v392_v52 }
 0x210   :  { %552 = vst.msk [vmem:[#allocation2] sm:$0xf] %vm551_vm2, %v622_v57  ;;  %v479_v48 = vadd.f32 %v987_v60, %v456_v58  ;;  %v431_v63 = vmul.f32 %v708_v26, %v931_v38 }
 0x211   :  { %v623_v2 = vpack.c.bf16 %v472_v59, %v472_v59  ;;  %v457_v3 = vmul.f32 %v981_v56, %v434_v61  ;;  %721 = vrsqrt.f32 %v408_v18 }
 0x212   :  { %v710_v4 = vpop.eup %709  ;;  %v630_v5 = vpack.c.bf16 %v479_v48, %v479_v48  ;;  %v454_v6 = vmul.f32 %v981_v56, %v431_v63 }
 0x213   :  { %v712_v1 = vpop.eup %711  ;;  %553 = vst.msk [vmem:[#allocation2 + $0x4] sm:$0xf] %vm551_vm2, %v623_v2  ;;  %v480_v27 = vadd.f32 %v987_v60, %v457_v3  ;;  %v432_v9 = vmul.f32 %v710_v4, %v928_v33 }
 0x214   :  { %560 = vst.msk [vmem:[#allocation2 + $0x20] sm:$0xf] %vm551_vm2, %v630_v5  ;;  %v477_v10 = vadd.f32 %v987_v60, %v454_v6  ;;  %v429_v38 = vmul.f32 %v712_v1, %v942_v39 }
 0x215   :  { %v631_v11 = vpack.c.bf16 %v480_v27, %v480_v27  ;;  %v455_v12 = vmul.f32 %v981_v56, %v432_v9 }
 0x216   :  { %v714_v13 = vpop.eup %713  ;;  %v628_v14 = vpack.c.bf16 %v477_v10, %v477_v10  ;;  %v452_v15 = vmul.f32 %v981_v56, %v429_v38 }
 0x217   :  { %v716_v55 = vpop.eup %715  ;;  %561 = vst.msk [vmem:[#allocation2 + $0x24] sm:$0xf] %vm551_vm2, %v631_v11  ;;  %v478_v54 = vadd.f32 %v987_v60, %v455_v12  ;;  %v430_v33 = vmul.f32 %v714_v13, %v939_v40 }
 0x218   :  { %558 = vst.msk [vmem:[#allocation2 + $0x18] sm:$0xf] %vm551_vm2, %v628_v14  ;;  %v475_v16 = vadd.f32 %v987_v60, %v452_v15  ;;  %v437_v39 = vmul.f32 %v716_v55, %v955_v62 }
 0x219   :  { %v629_v19 = vpack.c.bf16 %v478_v54, %v478_v54  ;;  %v453_v20 = vmul.f32 %v981_v56, %v430_v33 }
 0x21a   :  { %v718_v7 = vpop.eup %717  ;;  %v626_v21 = vpack.c.bf16 %v475_v16, %v475_v16  ;;  %v460_v0 = vmul.f32 %v981_v56, %v437_v39 }
 0x21b   :  { %v720_v22 = vpop.eup %719  ;;  %559 = vst.msk [vmem:[#allocation2 + $0x1c] sm:$0xf] %vm551_vm2, %v629_v19  ;;  %v476_v23 = vadd.f32 %v987_v60, %v453_v20  ;;  %v438_v40 = vmul.f32 %v718_v7, %v952_v47 }
 0x21c   :  { %556 = vst.msk [vmem:[#allocation2 + $0x10] sm:$0xf] %vm551_vm2, %v626_v21  ;;  %v483_v24 = vadd.f32 %v987_v60, %v460_v0  ;;  %v439_v62 = vmul.f32 %v720_v22, %v966_v50 }
 0x21d   :  { %v627_v25 = vpack.c.bf16 %v476_v23, %v476_v23  ;;  %v461_v28 = vmul.f32 %v981_v56, %v438_v40 }
 0x21e   :  { %v722_v29 = vpop.eup %721  ;;  %v634_v30 = vpack.c.bf16 %v483_v24, %v483_v24  ;;  %v462_v31 = vmul.f32 %v981_v56, %v439_v62 }
 0x21f   :  { %557 = vst.msk [vmem:[#allocation2 + $0x14] sm:$0xf] %vm551_vm2, %v627_v25  ;;  %v484_v32 = vadd.f32 %v987_v60, %v461_v28  ;;  %v440_v35 = vmul.f32 %v722_v29, %v963_v51 }
 0x220   :  { %564 = vst.msk [vmem:[#allocation2 + $0x30] sm:$0xf] %vm551_vm2, %v634_v30  ;;  %v485_v47 = vadd.f32 %v987_v60, %v462_v31 }
 0x221   :  { %v635_v36 = vpack.c.bf16 %v484_v32, %v484_v32  ;;  %v463_v50 = vmul.f32 %v981_v56, %v440_v35 }
 0x222   :  { %v636_v37 = vpack.c.bf16 %v485_v47, %v485_v47 }
 0x223   :  { %565 = vst.msk [vmem:[#allocation2 + $0x34] sm:$0xf] %vm551_vm2, %v635_v36  ;;  %v486_v17 = vadd.f32 %v987_v60, %v463_v50 }
 0x224   :  { %566 = vst.msk [vmem:[#allocation2 + $0x38] sm:$0xf] %vm551_vm2, %v636_v37 }
 0x225   :  { %v637_v34 = vpack.c.bf16 %v486_v17, %v486_v17 }
 0x227   :  { %567 = vst.msk [vmem:[#allocation2 + $0x3c] sm:$0xf] %vm551_vm2, %v637_v34 }
 0x228   :  { %734 = shalt.err (!%p731_p4)
}
 0x229   :  { %s746_s19 = smov 64   ;;  %s747_s20 = smov 4  }
 0x22a   :  { %579 = dma.vmem_to_hbm [thread:$0]  %s574_s4, 1024, %s1060_s5, [#allocation3], %s746_s19, %s746_s19, %s747_s20  }
 0x22b   :  { %743 = dma.done.wait [#allocation3], 1024  }
 0x22c   :  { %744 = vsyncadd [#allocation3], 4294966272 }
 0x22d   :  { %583 = vsyncpa [#allocation3], 1 }

</bundles_post_ra>
